<compile_context>
chip_gen: v6e
topology: v6e:2x2x1
jax: 0.10.0
libtpu: 0.0.40
codegen_flags: <defaults>
</compile_context>

<pallas_src>
import functools
from typing import NamedTuple, Tuple

import jax
import jax.numpy as jnp
from jax.experimental import pallas as pl
from jax.experimental.pallas import tpu as pltpu

_LANE = 128     # vreg lane width
_SUBLANE = 8    # f32 sublane count
_VMEM_CAP = 48 << 20   # stay well under v7x's 64 MiB physical VMEM


def _round_up(x: int, m: int) -> int:
    return ((x + m - 1) // m) * m


def _cdiv(a: int, b: int) -> int:
    return -(-a // b)


class PreparedParams(NamedTuple):
    weights: Tuple[jax.Array, ...]   # layer l: (in_l, out_pad_l), lane-padded out dims
    biases: jax.Array                # (num_layers, w_max) f32, zero-padded rows
    out_dim: int                     # true final output width (e.g. 1)


def prepare_params(params, *, weights_dtype=jnp.float32) -> PreparedParams:
    """Pad/pack the Linear parameters ONCE (hoisted out of the per-call path).

    params : list of (w_t, b) with w_t: (in, out) (transposed from torch's
             (out, in)), b: (out,).
    weights_dtype : jnp.float32 (default) or jnp.bfloat16 for v6e/v7x
                    (halves weight DMA bytes / VMEM; accumulation stays f32).
    """
    num_layers = len(params)
    out_dims = [int(w.shape[1]) for w, _ in params]
    out_pads = [_round_up(d, _LANE) for d in out_dims]
    # First layer keeps the TRUE input dim (no lane padding); later in-dims chain
    # to the previous layer's padded out-dim (padded lanes carry exact zeros).
    in_dims = [int(params[0][0].shape[0])] + out_pads[:-1]
    w_max = max(out_pads)

    w_padded = []
    b_packed = jnp.zeros((num_layers, w_max), jnp.float32)
    for l, (w, b) in enumerate(params):
        wp = jnp.zeros((in_dims[l], out_pads[l]), weights_dtype)
        wp = wp.at[: w.shape[0], : w.shape[1]].set(w.astype(weights_dtype))
        w_padded.append(wp)
        b_packed = b_packed.at[l, : b.size].set(b.reshape(-1).astype(jnp.float32))
    return PreparedParams(weights=tuple(w_padded), biases=b_packed, out_dim=out_dims[-1])


def _choose_row_tile(N: int, block_m: int):
    """Adaptive batch tile: bounds padding waste and gives >=2 parallel grid
    steps for moderate batches (both v7x TensorCores get work)."""
    block_m = _round_up(max(int(block_m), _SUBLANE), _SUBLANE)   # defensive 8-align
    min_tiles = 2 if N >= 2 * _SUBLANE else 1
    n_tiles = max(_cdiv(N, block_m), min_tiles)
    tm = min(_round_up(_cdiv(N, n_tiles), _SUBLANE), block_m)
    n_tiles = _cdiv(N, tm)
    return tm, n_tiles * tm


def _fused_mlp_kernel(x_ref, *refs, num_layers, out_widths, out_dim, compute_dtype):
    """One grid step: h = x_tile; for each layer: h = relu?(h @ W_l + b_l).

    refs = (w_0, ..., w_{L-1}, b_packed, o_ref).  All intermediates live in
    vregs/VMEM; only the narrow (tm, out_dim) final activation is stored.
    """
    w_refs = refs[:num_layers]
    b_ref = refs[num_layers]          # (num_layers, w_max) packed biases (f32)
    o_ref = refs[num_layers + 1]

    h = x_ref[...]
    if h.dtype != compute_dtype:
        h = h.astype(compute_dtype)
    for l in range(num_layers):
        w = w_refs[l][...]
        if w.dtype != compute_dtype:
            w = w.astype(compute_dtype)
        y = jnp.dot(h, w, preferred_element_type=jnp.float32)
        y = y + b_ref[l:l + 1, 0:out_widths[l]]       # (tm, ow) + (1, ow), static slice
        if l < num_layers - 1:
            y = jnp.maximum(y, 0.0).astype(compute_dtype)   # ReLU between layers
        h = y
    # Narrow store: only the true output lanes go back to HBM (masked vst,
    # 128x fewer writeback bytes than a lane-dense slab).
    o_ref[...] = h[:, :out_dim].astype(o_ref.dtype)


def mlp_pallas(x, weights, biases, *, out_dim, compute_dtype=jnp.float32,
               block_m: int = 512) -> jax.Array:
    """Fused forward pass of the Linear/ReLU stack on pre-padded parameters."""
    N, D = x.shape
    num_layers = len(weights)
    assert D == weights[0].shape[0], "input feature dim must match first weight"
    out_pads = tuple(int(w.shape[1]) for w in weights)

    tm, n_pad = _choose_row_tile(N, block_m)
    # Only the batch (row) axis ever needs padding now; skip the copy when aligned.
    x_p = x if n_pad == N else jnp.zeros((n_pad, D), x.dtype).at[:N, :].set(x)

    grid = (n_pad // tm,)
    in_specs = [pl.BlockSpec((tm, D), lambda i: (i, 0))]                  # x tile (unpadded lanes)
    for w in weights:                                                     # grid-resident weights
        in_specs.append(pl.BlockSpec(tuple(w.shape), lambda i: (0, 0)))
    in_specs.append(pl.BlockSpec(tuple(biases.shape), lambda i: (0, 0))) # packed biases

    # Explicit VMEM budget (double-buffered x/out tiles + resident weights/biases
    # + intermediate activations), capped under v7x's 64 MiB physical VMEM.
    est = (2 * (tm * D + tm * out_dim) * x.dtype.itemsize
           + 2 * sum(w.size * w.dtype.itemsize for w in weights)
           + 2 * biases.size * 4
           + 2 * tm * max(out_pads) * 4)
    vmem_limit = min(_VMEM_CAP, max(4 << 20, 2 * est))

    kernel = functools.partial(
        _fused_mlp_kernel,
        num_layers=num_layers,
        out_widths=out_pads,
        out_dim=out_dim,
        compute_dtype=compute_dtype,
    )
    y_pad = pl.pallas_call(
        kernel,
        out_shape=jax.ShapeDtypeStruct((n_pad, out_dim), x.dtype),
        grid=grid,
        in_specs=in_specs,
        out_specs=pl.BlockSpec((tm, out_dim), lambda i: (i, 0)),          # narrow writeback
        compiler_params=pltpu.CompilerParams(
            dimension_semantics=("parallel",),
            vmem_limit_bytes=vmem_limit,
        ),
    )(x_p, *weights, biases)

    return y_pad if n_pad == N else y_pad[:N]


_mlp_pallas_jit = jax.jit(
    mlp_pallas, static_argnames=("out_dim", "compute_dtype", "block_m"))


def neural_network_forward(car: jax.Array, prepared: PreparedParams, *,
                           compute_dtype=jnp.float32, block_m: int = 512) -> jax.Array:
    """NeuralNetwork.forward: car_price = layer_stack(car).

    For large, compute-bound widths on v6e/v7x, build `prepared` with
    weights_dtype=jnp.bfloat16 and pass compute_dtype=jnp.bfloat16 here
    (f32 accumulation is kept) and relax tolerances.
    """
    return _mlp_pallas_jit(car, prepared.weights, prepared.biases,
                           out_dim=prepared.out_dim,
                           compute_dtype=compute_dtype, block_m=block_m)


def init_mlp_params(nodes, key):
    """torch.nn.Linear default init: W, b ~ U(-1/sqrt(fan_in), 1/sqrt(fan_in)).
    Weights stored transposed as (in, out)."""
    params = []
    for i in range(len(nodes) - 1):
        fan_in, fan_out = nodes[i], nodes[i + 1]
        key, kw, kb = jax.random.split(key, 3)
        bound = 1.0 / jnp.sqrt(jnp.float32(fan_in))
        w_t = jax.random.uniform(kw, (fan_in, fan_out), jnp.float32, -bound, bound)
        b = jax.random.uniform(kb, (fan_out,), jnp.float32, -bound, bound)
        params.append((w_t, b))
    return params


def neural_network_forward_ref(car: jax.Array, params) -> jax.Array:
    h = car
    for l, (w_t, b) in enumerate(params):
        h = h @ w_t + b
        if l < len(params) - 1:
            h = jnp.maximum(h, 0.0)
    return h


# TODO(synk): CSV weight save/load and the Adam training / test loops from the
# PyTorch module are host-side I/O + autodiff and are not kernel work; only the
# forward pass is implemented here.

if __name__ == "__main__":
    # nodes list as in NeuralNetwork.__init__: [in_dim, hidden..., out_dim]
    nodes = [32, 64, 32, 1]
    batch = 8

    key = jax.random.PRNGKey(0)
    key_params, key_x = jax.random.split(key)
    params = init_mlp_params(nodes, key_params)

    # One-time parameter prep (padding/packing hoisted out of the forward path).
    prepared = prepare_params(params)           # f32 weights (strict-check path)

    # "car" input data: (N, D) = (batch, nodes[0])
    car = jax.random.normal(key_x, (batch, nodes[0]), jnp.float32)

    car_price = jax.block_until_ready(neural_network_forward(car, prepared))

    # correctness check vs plain-JAX reference (f32 path)
    ref = neural_network_forward_ref(car, params)
    assert car_price.shape == (batch, nodes[-1])
    assert jnp.allclose(car_price, ref, atol=1e-5, rtol=1e-5)

    print("KERNEL_OK")
</pallas_src>

<mosaic_0001>
module attributes {stable_mosaic.version = 11 : i64} {
  func.func @_fused_mlp_kernel(%arg0: i32, %arg1: memref<8x32xf32, #tpu.memory_space<vmem>>, %arg2: memref<32x128xf32, #tpu.memory_space<vmem>>, %arg3: memref<128x128xf32, #tpu.memory_space<vmem>>, %arg4: memref<128x128xf32, #tpu.memory_space<vmem>>, %arg5: memref<3x128xf32, #tpu.memory_space<vmem>>, %arg6: memref<8x1xf32, #tpu.memory_space<vmem>>) attributes {dimension_semantics = [#tpu.dimension_semantics<parallel>], iteration_bounds = array<i64: 1>, scalar_prefetch = 0 : i64, scratch_operands = 0 : i64, tpu.core_type = #tpu.core_type<tc>, window_params = [{transform_indices = @transform_0, window_bounds = array<i64: 8, 32>}, {pipeline_mode = #tpu.pipeline_mode<synchronous>, transform_indices = @transform_1, window_bounds = array<i64: 32, 128>}, {pipeline_mode = #tpu.pipeline_mode<synchronous>, transform_indices = @transform_2, window_bounds = array<i64: 128, 128>}, {pipeline_mode = #tpu.pipeline_mode<synchronous>, transform_indices = @transform_3, window_bounds = array<i64: 128, 128>}, {pipeline_mode = #tpu.pipeline_mode<synchronous>, transform_indices = @transform_4, window_bounds = array<i64: 3, 128>}, {transform_indices = @transform_5, window_bounds = array<i64: 8, 1>}]} {
    %c0 = arith.constant 0 : index
    %c0_0 = arith.constant 0 : index
    %0 = vector.load %arg1[%c0, %c0_0] : memref<8x32xf32, #tpu.memory_space<vmem>>, vector<8x32xf32>
    %c0_1 = arith.constant 0 : index
    %c0_2 = arith.constant 0 : index
    %1 = vector.load %arg2[%c0_1, %c0_2] : memref<32x128xf32, #tpu.memory_space<vmem>>, vector<32x128xf32>
    %cst = arith.constant dense<0.000000e+00> : vector<8x128xf32>
    %2 = tpu.matmul %0, %1, %cst {dimension_numbers = #tpu.dot_dimension_numbers<[1], [0], [0], [1], [0, 0, 1, 1], [], []>} : vector<8x32xf32>, vector<32x128xf32>, vector<8x128xf32> -> vector<8x128xf32>
    %c0_3 = arith.constant 0 : index
    %c0_4 = arith.constant 0 : index
    %3 = vector.load %arg5[%c0_3, %c0_4] : memref<3x128xf32, #tpu.memory_space<vmem>>, vector<1x128xf32>
    %4 = vector.broadcast %3 : vector<1x128xf32> to vector<8x128xf32>
    %5 = arith.addf %2, %4 : vector<8x128xf32>
    %cst_5 = arith.constant 0.000000e+00 : f32
    %6 = vector.broadcast %cst_5 : f32 to vector<8x128xf32>
    %7 = arith.maximumf %5, %6 : vector<8x128xf32>
    %c0_6 = arith.constant 0 : index
    %c0_7 = arith.constant 0 : index
    %8 = vector.load %arg3[%c0_6, %c0_7] : memref<128x128xf32, #tpu.memory_space<vmem>>, vector<128x128xf32>
    %cst_8 = arith.constant dense<0.000000e+00> : vector<8x128xf32>
    %9 = tpu.matmul %7, %8, %cst_8 {dimension_numbers = #tpu.dot_dimension_numbers<[1], [0], [0], [1], [0, 0, 1, 1], [], []>} : vector<8x128xf32>, vector<128x128xf32>, vector<8x128xf32> -> vector<8x128xf32>
    %c1 = arith.constant 1 : index
    %c0_9 = arith.constant 0 : index
    %10 = vector.load %arg5[%c1, %c0_9] : memref<3x128xf32, #tpu.memory_space<vmem>>, vector<1x128xf32>
    %11 = vector.broadcast %10 : vector<1x128xf32> to vector<8x128xf32>
    %12 = arith.addf %9, %11 : vector<8x128xf32>
    %cst_10 = arith.constant 0.000000e+00 : f32
    %13 = vector.broadcast %cst_10 : f32 to vector<8x128xf32>
    %14 = arith.maximumf %12, %13 : vector<8x128xf32>
    %c0_11 = arith.constant 0 : index
    %c0_12 = arith.constant 0 : index
    %15 = vector.load %arg4[%c0_11, %c0_12] : memref<128x128xf32, #tpu.memory_space<vmem>>, vector<128x128xf32>
    %cst_13 = arith.constant dense<0.000000e+00> : vector<8x128xf32>
    %16 = tpu.matmul %14, %15, %cst_13 {dimension_numbers = #tpu.dot_dimension_numbers<[1], [0], [0], [1], [0, 0, 1, 1], [], []>} : vector<8x128xf32>, vector<128x128xf32>, vector<8x128xf32> -> vector<8x128xf32>
    %c2 = arith.constant 2 : index
    %c0_14 = arith.constant 0 : index
    %17 = vector.load %arg5[%c2, %c0_14] : memref<3x128xf32, #tpu.memory_space<vmem>>, vector<1x128xf32>
    %18 = vector.broadcast %17 : vector<1x128xf32> to vector<8x128xf32>
    %19 = arith.addf %16, %18 : vector<8x128xf32>
    %20 = vector.extract_strided_slice %19 {offsets = [0, 0], sizes = [8, 1], strides = [1, 1]} : vector<8x128xf32> to vector<8x1xf32>
    %c0_15 = arith.constant 0 : index
    %c0_16 = arith.constant 0 : index
    %21 = vector.load %arg6[%c0_15, %c0_16] : memref<8x1xf32, #tpu.memory_space<vmem>>, vector<8x1xf32>
    tpu.vector_store %arg6[%c0_15, %c0_16], %20 {strides = array<i32>} : memref<8x1xf32, #tpu.memory_space<vmem>>, vector<8x1xf32>,
    return
  }
  func.func @transform_0(%arg0: i32) -> (i32, i32) {
    %c0_i32 = arith.constant 0 : i32
    %c0_i32_0 = arith.constant 0 : i32
    return %arg0, %c0_i32 : i32, i32
  }
  func.func @transform_1(%arg0: i32) -> (i32, i32) {
    %c0_i32 = arith.constant 0 : i32
    %c0_i32_0 = arith.constant 0 : i32
    %c0_i32_1 = arith.constant 0 : i32
    return %c0_i32, %c0_i32_0 : i32, i32
  }
  func.func @transform_2(%arg0: i32) -> (i32, i32) {
    %c0_i32 = arith.constant 0 : i32
    %c0_i32_0 = arith.constant 0 : i32
    %c0_i32_1 = arith.constant 0 : i32
    return %c0_i32, %c0_i32_0 : i32, i32
  }
  func.func @transform_3(%arg0: i32) -> (i32, i32) {
    %c0_i32 = arith.constant 0 : i32
    %c0_i32_0 = arith.constant 0 : i32
    %c0_i32_1 = arith.constant 0 : i32
    return %c0_i32, %c0_i32_0 : i32, i32
  }
  func.func @transform_4(%arg0: i32) -> (i32, i32) {
    %c0_i32 = arith.constant 0 : i32
    %c0_i32_0 = arith.constant 0 : i32
    %c0_i32_1 = arith.constant 0 : i32
    return %c0_i32, %c0_i32_0 : i32, i32
  }
  func.func @transform_5(%arg0: i32) -> (i32, i32) {
    %c0_i32 = arith.constant 0 : i32
    %c0_i32_0 = arith.constant 0 : i32
    return %arg0, %c0_i32 : i32, i32
  }
}

</mosaic_0001>

<bundles_post_ra>
// kernel: mlp_pallas.1
= control target key start
LH: loop header
LB: loop body
LE: loop exit
PB: predicated region body
PF: predicated region fallthrough
CT: control target
= control target key end

     0   :  { %10 = vsyncpa [#allocation3], 0  ;;  %s681_s0 = inlined_call_operand.hbm [shape: f32[8,32], index: 0, kind: input, shape index: {}]   ;;  %s682_s1 = inlined_call_operand.hbm [shape: f32[32,128], index: 1, kind: input, shape index: {}]   ;;  %s683_s2 = inlined_call_operand.hbm [shape: f32[128,128], index: 2, kind: input, shape index: {}]   ;;  %s684_s3 = inlined_call_operand.hbm [shape: f32[128,128], index: 3, kind: input, shape index: {}]   ;;  %s685_s4 = inlined_call_operand.vmem [shape: f32[3,128], index: 4, kind: input, shape index: {}]   ;;  %s686_s5 = inlined_call_operand.vmem [shape: f32[8,1], index: 5, kind: output, shape index: {}]  }
   0x1   :  { %11 = vsyncpa [#allocation5], 0 }
   0x2   :  { %12 = vsyncpa [#allocation8], 0  ;;  %s568_s18 = smov [#allocation4]  }
   0x3   :  { %s28_s19 = sshll.u32 %s568_s18, 4  ;;  %s29_s19 = int_to_ptr.vmem [resolvable:$true] %s28_s19 }
   0x4   :  { %s490_s20 = scalar_lea.vmem %s29_s19, 512  ;;  %p495_p1 = scmp.lt.s32.totalorder %s29_s19, %s29_s19 }
   0x5   :  { %p491_p0 = scmp.ne.s32.totalorder %s29_s19, %s490_s20  ;;  %p496_p2 = scmp.lt.s32.totalorder %s490_s20, %s490_s20 }
   0x7   :  { %p497_p3 = por %p496_p2, %p495_p1 }
   0x9   :  { %p498_p4 = pnand %p497_p3, %p491_p0 }
   0xb   :  { %501 = shalt.err (!%p498_p4)
}
   0xc   :  { %s569_s21 = smov 128   ;;  %s570_s22 = smov 8  }
   0xd   :  { %34 = dma.hbm_to_vmem [thread:$0]  %s682_s1, 512, %s29_s19, [#allocation5], %s569_s21, %s569_s21, %s570_s22  }
   0xe   :  { %s571_s25 = smov [#allocation2]   ;;  %s572_s27 = smov [#allocation6]  }
   0xf   :  { %s19_s26 = sshll.u32 %s571_s25, 4  ;;  %s40_s28 = sshll.u32 %s572_s27, 4  ;;  %s20_s26 = int_to_ptr.vmem [resolvable:$true] %s19_s26  ;;  %s41_s28 = int_to_ptr.vmem [resolvable:$true] %s40_s28 }
  0x10   :  { %s510_s29 = scalar_lea.vmem %s20_s26, 128  ;;  %p515_p6 = scmp.lt.s32.totalorder %s20_s26, %s20_s26 }
  0x11   :  { %p511_p5 = scmp.ne.s32.totalorder %s20_s26, %s510_s29  ;;  %p516_p7 = scmp.lt.s32.totalorder %s510_s29, %s510_s29 }
  0x13   :  { %p517_p8 = por %p516_p7, %p515_p6 }
  0x15   :  { %p518_p9 = pnand %p517_p8, %p511_p5 }
  0x17   :  { %521 = shalt.err (!%p518_p9)
}
  0x18   :  { %22 = dma.hbm_to_vmem [thread:$0]  %s681_s0, 128, %s20_s26, [#allocation3]  }
  0x19   :  { %s530_s7 = scalar_lea.vmem %s41_s28, 2048  ;;  %p535_p11 = scmp.lt.s32.totalorder %s41_s28, %s41_s28 }
  0x1a   :  { %p531_p10 = scmp.ne.s32.totalorder %s41_s28, %s530_s7  ;;  %p536_p12 = scmp.lt.s32.totalorder %s530_s7, %s530_s7 }
  0x1c   :  { %p537_p13 = por %p536_p12, %p535_p11 }
  0x1e   :  { %p538_p0 = pnand %p537_p13, %p531_p10 }
  0x20   :  { %541 = shalt.err (!%p538_p0)
}
  0x21   :  { %46 = dma.hbm_to_vmem [thread:$0]  %s683_s2, 2048, %s41_s28, [#allocation5], %s569_s21, %s569_s21, %s570_s22  }
  0x22   :  { %s573_s9 = smov [#allocation7]  }
  0x23   :  { %s52_s10 = sshll.u32 %s573_s9, 4  ;;  %s53_s10 = int_to_ptr.vmem [resolvable:$true] %s52_s10 }
  0x24   :  { %s550_s11 = scalar_lea.vmem %s53_s10, 2048  ;;  %p555_p2 = scmp.lt.s32.totalorder %s53_s10, %s53_s10 }
  0x25   :  { %p551_p1 = scmp.ne.s32.totalorder %s53_s10, %s550_s11  ;;  %p556_p3 = scmp.lt.s32.totalorder %s550_s11, %s550_s11 }
  0x27   :  { %p557_p4 = por %p556_p3, %p555_p2 }
  0x29   :  { %p558_p5 = pnand %p557_p4, %p551_p1 }
  0x2b   :  { %561 = shalt.err (!%p558_p5)
}
  0x2c   :  { %58 = dma.hbm_to_vmem [thread:$0]  %s684_s3, 2048, %s53_s10, [#allocation8], %s569_s21, %s569_s21, %s570_s22  }
  0x2d   :  { %562 = dma.done.wait [#allocation3], 128  }
  0x2e   :  { %563 = vsyncadd [#allocation3], 4294967168 }
  0x2f   :  { %564 = dma.done.wait [#allocation5], 2560  }
  0x30   :  { %565 = vsyncadd [#allocation5], 4294964736 }
  0x31   :  { %566 = dma.done.wait [#allocation8], 2048  }
  0x32   :  { %567 = vsyncadd [#allocation8], 4294965248  ;;  %v574_v0 = vmov 0.0   ;;  %vm575_vm0 = vmmov 0   ;;  %v77_v1 = vld [vmem:[#allocation4 + $0x18] sm:$0xff]  ;;  %v76_v2 = vld [vmem:[#allocation4 + $0x10] sm:$0xff] }
  0x33   :  { %393 = vmatprep.subr.mxu0 %v574_v0  ;;  %401 = vmatprep.mubr.msk.f32.mxu0 %vm575_vm0, %v574_v0  ;;  %v173_v3 = vld [vmem:[#allocation6 + $0x78] sm:$0xff]  ;;  %v75_v4 = vld [vmem:[#allocation4 + $0x8] sm:$0xff]  ;;  %v172_v5 = vld [vmem:[#allocation6 + $0x70] sm:$0xff]  ;;  %vm83_vm1 = vcmask 261120   ;;  %vm341_vm2 = vcmask 7168  }
  0x34   :  { %404 = vmatprep.subr.mxu1 %v574_v0  ;;  %436 = vmatprep.mubr.msk.f32.mxu1 %vm575_vm0, %v574_v0  ;;  %v171_v6 = vld [vmem:[#allocation6 + $0x68] sm:$0xff]  ;;  %v74_v7 = vld [vmem:[#allocation4] sm:$0xff]  ;;  %v73_v8 = vld [vmem:[#allocation2] sm:$0xff] }
  0x35   :  { %394 = vmatpush3.msra.mxu0 %v77_v1  ;;  %405 = vmatpush3.msra.mxu1 %v173_v3  ;;  %v170_v9 = vld [vmem:[#allocation6 + $0x60] sm:$0xff]  ;;  %v169_v10 = vld [vmem:[#allocation6 + $0x58] sm:$0xff]  ;;  %v168_v11 = vld [vmem:[#allocation6 + $0x50] sm:$0xff] }
  0x36   :  { %395 = vmatprep.subr.mxu0 %v574_v0  ;;  %406 = vmatprep.subr.mxu1 %v574_v0  ;;  %v167_v12 = vld [vmem:[#allocation6 + $0x48] sm:$0xff]  ;;  %v166_v13 = vld [vmem:[#allocation6 + $0x40] sm:$0xff]  ;;  %v165_v14 = vld [vmem:[#allocation6 + $0x38] sm:$0xff] }
  0x37   :  { %396 = vmatpush3.msra.mxu0 %v76_v2  ;;  %407 = vmatpush3.msra.mxu1 %v172_v5  ;;  %v164_v15 = vld [vmem:[#allocation6 + $0x30] sm:$0xff]  ;;  %v163_v16 = vld [vmem:[#allocation6 + $0x28] sm:$0xff]  ;;  %v162_v17 = vld [vmem:[#allocation6 + $0x20] sm:$0xff] }
  0x38   :  { %397 = vmatprep.subr.mxu0 %v574_v0  ;;  %408 = vmatprep.subr.mxu1 %v574_v0  ;;  %v161_v18 = vld [vmem:[#allocation6 + $0x18] sm:$0xff]  ;;  %v160_v19 = vld [vmem:[#allocation6 + $0x10] sm:$0xff]  ;;  %v159_v20 = vld [vmem:[#allocation6 + $0x8] sm:$0xff] }
  0x39   :  { %398 = vmatpush3.msra.mxu0 %v75_v4  ;;  %409 = vmatpush3.msra.mxu1 %v171_v6  ;;  %v158_v21 = vld [vmem:[#allocation6] sm:$0xff]  ;;  %v265_v22 = vld [vmem:[#allocation7 + $0x78] sm:$0xff]  ;;  %v264_v23 = vld [vmem:[#allocation7 + $0x70] sm:$0xff] }
  0x3a   :  { %399 = vmatprep.subr.mxu0 %v574_v0  ;;  %410 = vmatprep.subr.mxu1 %v574_v0  ;;  %v263_v24 = vld [vmem:[#allocation7 + $0x68] sm:$0xff]  ;;  %v262_v25 = vld [vmem:[#allocation7 + $0x60] sm:$0xff]  ;;  %v261_v26 = vld [vmem:[#allocation7 + $0x58] sm:$0xff] }
  0x3b   :  { %400 = vmatpush3.msra.mxu0 %v74_v7  ;;  %411 = vmatpush3.msra.mxu1 %v170_v9  ;;  %v260_v27 = vld [vmem:[#allocation7 + $0x50] sm:$0xff]  ;;  %v259_v28 = vld [vmem:[#allocation7 + $0x48] sm:$0xff]  ;;  %v258_v29 = vld [vmem:[#allocation7 + $0x40] sm:$0xff] }
  0x3c   :  { %402 = vmatmul.mubr.msk.f32.vlgmr.msra.gmra.mxu0 %vm83_vm1, %v73_v8  ;;  %412 = vmatprep.subr.mxu1 %v574_v0  ;;  %v257_v30 = vld [vmem:[#allocation7 + $0x38] sm:$0xff]  ;;  %v256_v31 = vld [vmem:[#allocation7 + $0x30] sm:$0xff]  ;;  %v255_v32 = vld [vmem:[#allocation7 + $0x28] sm:$0xff] }
  0x3d   :  { %439 = vmatprep.subr.mxu0 %v574_v0  ;;  %413 = vmatpush3.msra.mxu1 %v169_v10  ;;  %v254_v33 = vld [vmem:[#allocation7 + $0x20] sm:$0xff]  ;;  %v253_v34 = vld [vmem:[#allocation7 + $0x18] sm:$0xff]  ;;  %v252_v40 = vld [vmem:[#allocation7 + $0x10] sm:$0xff] }
  0x3e   :  { %471 = vmatprep.mubr.msk.f32.mxu0 %vm575_vm0, %v574_v0  ;;  %414 = vmatprep.subr.mxu1 %v574_v0  ;;  %v350_v35 = vld [vmem:[%s685_s4] ss:$0 sm:$0xff]  ;;  %v251_v41 = vld [vmem:[#allocation7 + $0x8] sm:$0xff]  ;;  %v250_v42 = vld [vmem:[#allocation7] sm:$0xff] }
  0x3f   :  { %415 = vmatpush3.msra.mxu1 %v168_v11  ;;  %440 = vmatpush3.msra.mxu0 %v265_v22  ;;  %v352_v43 = vld [vmem:[%s685_s4 + $0x1] ss:$0 sm:$0xff]  ;;  %v353_v48 = vld [vmem:[%s685_s4 + $0x2] ss:$0 sm:$0xff] }
  0x40   :  { %416 = vmatprep.subr.mxu1 %v574_v0  ;;  %441 = vmatprep.subr.mxu0 %v574_v0 }
  0x41   :  { %417 = vmatpush3.msra.mxu1 %v167_v12  ;;  %442 = vmatpush3.msra.mxu0 %v264_v23 }
  0x42   :  { %418 = vmatprep.subr.mxu1 %v574_v0  ;;  %443 = vmatprep.subr.mxu0 %v574_v0 }
  0x43   :  { %419 = vmatpush3.msra.mxu1 %v166_v13  ;;  %444 = vmatpush3.msra.mxu0 %v263_v24 }
  0x44   :  { %420 = vmatprep.subr.mxu1 %v574_v0  ;;  %445 = vmatprep.subr.mxu0 %v574_v0 }
  0x45   :  { %421 = vmatpush3.msra.mxu1 %v165_v14  ;;  %446 = vmatpush3.msra.mxu0 %v262_v25 }
  0x46   :  { %422 = vmatprep.subr.mxu1 %v574_v0  ;;  %447 = vmatprep.subr.mxu0 %v574_v0 }
  0x47   :  { %423 = vmatpush3.msra.mxu1 %v164_v15  ;;  %448 = vmatpush3.msra.mxu0 %v261_v26 }
  0x48   :  { %424 = vmatprep.subr.mxu1 %v574_v0  ;;  %449 = vmatprep.subr.mxu0 %v574_v0 }
  0x49   :  { %425 = vmatpush3.msra.mxu1 %v163_v16  ;;  %450 = vmatpush3.msra.mxu0 %v260_v27 }
  0x4a   :  { %426 = vmatprep.subr.mxu1 %v574_v0  ;;  %451 = vmatprep.subr.mxu0 %v574_v0 }
  0x4b   :  { %427 = vmatpush3.msra.mxu1 %v162_v17  ;;  %452 = vmatpush3.msra.mxu0 %v259_v28 }
  0x4c   :  { %428 = vmatprep.subr.mxu1 %v574_v0  ;;  %453 = vmatprep.subr.mxu0 %v574_v0 }
  0x4d   :  { %429 = vmatpush3.msra.mxu1 %v161_v18  ;;  %454 = vmatpush3.msra.mxu0 %v258_v29 }
  0x4e   :  { %430 = vmatprep.subr.mxu1 %v574_v0  ;;  %455 = vmatprep.subr.mxu0 %v574_v0 }
  0x4f   :  { %431 = vmatpush3.msra.mxu1 %v160_v19  ;;  %456 = vmatpush3.msra.mxu0 %v257_v30 }
  0x50   :  { %432 = vmatprep.subr.mxu1 %v574_v0  ;;  %457 = vmatprep.subr.mxu0 %v574_v0 }
  0x51   :  { %433 = vmatpush3.msra.mxu1 %v159_v20  ;;  %458 = vmatpush3.msra.mxu0 %v256_v31 }
  0x52   :  { %434 = vmatprep.subr.mxu1 %v574_v0  ;;  %459 = vmatprep.subr.mxu0 %v574_v0 }
  0x53   :  { %435 = vmatpush3.msra.mxu1 %v158_v21  ;;  %460 = vmatpush3.msra.mxu0 %v255_v32 }
  0x54   :  { %461 = vmatprep.subr.mxu0 %v574_v0 }
  0x55   :  { %462 = vmatpush3.msra.mxu0 %v254_v33 }
  0x56   :  { %463 = vmatprep.subr.mxu0 %v574_v0 }
  0x57   :  { %464 = vmatpush3.msra.mxu0 %v253_v34 }
  0x58   :  { %465 = vmatprep.subr.mxu0 %v574_v0 }
  0x59   :  { %466 = vmatpush3.msra.mxu0 %v252_v40 }
  0x5a   :  { %467 = vmatprep.subr.mxu0 %v574_v0 }
  0x5b   :  { %468 = vmatpush3.msra.mxu0 %v251_v41 }
  0x5c   :  { %469 = vmatprep.subr.mxu0 %v574_v0 }
  0x5d   :  { %470 = vmatpush3.msra.mxu0 %v250_v42 }
  0xfc   :  { %v153_v36 = vpop.f32.mrf.mxu0 }
  0xfd   :  { %v154_v37 = vadd.f32 %v350_v35, %v153_v36 }
  0xfe   :  { %v403_v38 = vpop.f32.mrf.mxu0 }
  0xff   :  { %v157_v39 = vmax.f32 %v154_v37, 0.0 }
 0x101   :  { %437 = vmatmul.mubr.f32.vlgmr.msra.gmra.mxu1 %v157_v39 }
 0x1c1   :  { %v245_v44 = vpop.f32.mrf.mxu1 }
 0x1c2   :  { %v246_v45 = vadd.f32 %v352_v43, %v245_v44 }
 0x1c3   :  { %v438_v46 = vpop.f32.mrf.mxu1 }
 0x1c4   :  { %v249_v47 = vmax.f32 %v246_v45, 0.0 }
 0x1c6   :  { %472 = vmatmul.mubr.f32.vlgmr.msra.gmra.mxu0 %v249_v47 }
 0x286   :  { %v337_v49 = vpop.f32.mrf.mxu0 }
 0x287   :  { %v338_v50 = vadd.f32 %v353_v48, %v337_v49 }
 0x288   :  { %v473_v51 = vpop.f32.mrf.mxu0 }
 0x289   :  { %342 = vst.msk [vmem:[%s686_s5] sm:$0xff] %vm341_vm2, %v338_v50 }
 0x28a   :  { %347 = vsyncpa [#allocation3], 1 }
 0x28b   :  { %348 = vsyncpa [#allocation5], 1 }
 0x28c   :  { %349 = vsyncpa [#allocation8], 1 }

</bundles_post_ra>
